<compile_context>
chip_gen: v7x
topology: tpu7x:2x2x1
jax: 0.10.0
libtpu: 0.0.40
codegen_flags: <defaults>
</compile_context>

<pallas_src>
import jax
import jax.numpy as jnp
from jax.experimental import pallas as pl
from jax.experimental.pallas import tpu as pltpu

N_NODES = 100   # N in the PyTorch forward (hard-coded 100)
T_STEPS = 100   # T in the PyTorch forward (hard-coded 100)


def simple_linear_kernel(xT_ref, w1T_ref, b1_ref, whT_ref, bh_ref,
                         probs_ref, vals_ref):
    """One grid step processes a tile of `bt` batch elements.

    xT_ref:    (bt, E, N)  VMEM   per-node embeddings, transposed (N on lanes)
    w1T_ref:   (E, E)      VMEM   l1 weight transposed: (out, in)
    b1_ref:    (E, 1)      VMEM   l1 bias (column, broadcast over lanes)
    whT_ref:   (2, E)      VMEM   [l2 ; critic] weights, fused + transposed
    bh_ref:    (2,)        SMEM   [l2 bias, critic bias] scalars
    probs_ref: (bt, N)     VMEM   softmax(l2(h)) per batch row (lane-dense)
    vals_ref:  (bt, N)     VMEM   critic(h)      per batch row (lane-dense)
    """
    w1T = w1T_ref[...]                                               # (E, E)
    b1 = b1_ref[...]                                                 # (E, 1)
    whT = whT_ref[...]                                               # (2, E)
    bt = xT_ref.shape[0]

    for b in range(bt):  # static unroll over the batch tile (weights stay resident)
        xT = xT_ref[b]                                               # (E, N)

        # h^T = relu(W1^T @ x^T + b1): lane-dense (E, N), no transposes needed.
        h = jnp.dot(w1T, xT, preferred_element_type=jnp.float32)     # (E, N)
        h = jnp.maximum(h + b1, 0.0)

        # Fused policy/value heads: one (2, E) @ (E, N) matmul -> (2, N).
        heads = jnp.dot(whT, h, preferred_element_type=jnp.float32)  # (2, N)
        # l2 bias (bh_ref[0]) is a scalar added to every logit -> softmax-invariant,
        # so it is intentionally not applied.
        logits = heads[0:1, :]                                       # (1, N)
        vals = heads[1:2, :] + bh_ref[1]                             # (1, N)

        # Softmax over the node axis (single lane-dense row reduction).
        m = jnp.max(logits, axis=-1, keepdims=True)                  # (1, 1)
        p = jnp.exp(logits - m)                                      # (1, N)
        denom = jnp.sum(p, axis=-1, keepdims=True)                   # (1, 1)
        probs_ref[pl.ds(b, 1), :] = p * pl.reciprocal(denom, approx=True)
        vals_ref[pl.ds(b, 1), :] = vals


def simple_linear_forward(x, w1, b1, w2, b2, wc, bc, *, batch_tile=None):
    """x: (B, N, E) float32.  Weights in (in, out) layout; biases (1, out).

    batch_tile: batch rows per grid step.  Default = B (whole batch in one
    grid step, optimal for the single-TC v5e/v6e).  For large B on v7x, pass a
    multiple of 8 that divides B so the "parallel" grid axis can feed both
    TensorCores (keep 2x double-buffered x tiles well under the 64 MiB VMEM).
    """
    B, N, E = x.shape
    if batch_tile is None:
        batch_tile = B
    assert B % batch_tile == 0, "batch_tile must divide B"
    assert batch_tile == B or batch_tile % 8 == 0, (
        "batch_tile must equal B or be a multiple of 8 (output sublane tiling)")
    grid = (B // batch_tile,)

    # Present everything with N on the lane axis so the kernel is transpose-free.
    # (In the full model the init-embed could emit this layout directly.)
    xT = jnp.transpose(x, (0, 2, 1))                              # (B, E, N)
    w1T = w1.T                                                    # (E, E) (out, in)
    b1c = b1.reshape(E, 1)                                        # (E, 1)
    whT = jnp.concatenate([w2, wc], axis=1).T                     # (2, E)
    bh = jnp.concatenate([b2.reshape(-1), bc.reshape(-1)])        # (2,)

    probs, vals = pl.pallas_call(
        simple_linear_kernel,
        out_shape=(
            jax.ShapeDtypeStruct((B, N), jnp.float32),
            jax.ShapeDtypeStruct((B, N), jnp.float32),
        ),
        grid_spec=pltpu.PrefetchScalarGridSpec(
            num_scalar_prefetch=0,
            grid=grid,
            in_specs=[
                pl.BlockSpec((batch_tile, E, N), lambda g: (g, 0, 0)),   # x^T
                pl.BlockSpec((E, E), lambda g: (0, 0)),                  # W1^T
                pl.BlockSpec((E, 1), lambda g: (0, 0)),                  # b1
                pl.BlockSpec((2, E), lambda g: (0, 0)),                  # [W2|Wc]^T
                pl.BlockSpec(memory_space=pltpu.MemorySpace.SMEM),       # [b2,bc]
            ],
            out_specs=[
                pl.BlockSpec((batch_tile, N), lambda g: (g, 0)),   # probs (lane-dense)
                pl.BlockSpec((batch_tile, N), lambda g: (g, 0)),   # vals  (lane-dense)
            ],
        ),
        compiler_params=pltpu.CompilerParams(
            dimension_semantics=("parallel",)),
    )(xT, w1T, b1c, whT, bh)

    # action_probs.reshape(B, 1, N).expand(-1, T, -1)
    action_probs = jnp.broadcast_to(probs[:, None, :], (B, T_STEPS, N))
    return action_probs, vals


def _reference_forward(x, w1, b1, w2, b2, wc, bc):
    h = jnp.maximum(jnp.einsum("bne,eo->bno", x, w1) + b1, 0.0)
    logits = (jnp.einsum("bne,eo->bno", h, w2) + b2)[:, :, 0]
    probs = jax.nn.softmax(logits, axis=-1)
    vals = (jnp.einsum("bne,eo->bno", h, wc) + bc)[:, :, 0]
    B, N, _ = x.shape
    return jnp.broadcast_to(probs[:, None, :], (B, T_STEPS, N)), vals


if __name__ == "__main__":
    B = 2
    E = 32  # embedding_dim
    N = N_NODES

    key = jax.random.PRNGKey(0)
    kx, k1, k2, k3, k4, k5, k6 = jax.random.split(key, 7)

    # Synthetic init-embed output (stand-in for Perception(...)).
    x = jax.random.normal(kx, (B, N, E), dtype=jnp.float32)

    # Deterministic parameter init (nn.Linear shapes), stored as (in, out).
    w1 = jax.random.normal(k1, (E, E), dtype=jnp.float32) * 0.1
    b1 = jax.random.normal(k2, (1, E), dtype=jnp.float32) * 0.1
    w2 = jax.random.normal(k3, (E, 1), dtype=jnp.float32) * 0.1
    b2 = jax.random.normal(k4, (1, 1), dtype=jnp.float32) * 0.1
    wc = jax.random.normal(k5, (E, 1), dtype=jnp.float32) * 0.1
    bc = jax.random.normal(k6, (1, 1), dtype=jnp.float32) * 0.1

    action_probs, state_vals = simple_linear_forward(x, w1, b1, w2, b2, wc, bc)
    jax.block_until_ready((action_probs, state_vals))

    ref_probs, ref_vals = _reference_forward(x, w1, b1, w2, b2, wc, bc)
    assert action_probs.shape == (B, T_STEPS, N)
    assert state_vals.shape == (B, N)
    # Slightly looser probs tolerance: the kernel uses the approximate EUP
    # reciprocal for the softmax denominator.
    assert jnp.allclose(action_probs, ref_probs, atol=1e-4, rtol=1e-3)
    assert jnp.allclose(state_vals, ref_vals, atol=1e-5, rtol=1e-5)

    print("KERNEL_OK")
</pallas_src>

<mosaic_0001>
module attributes {stable_mosaic.version = 11 : i64} {
  func.func @simple_linear_kernel(%arg0: i32, %arg1: memref<2x32x100xf32, #tpu.memory_space<vmem>>, %arg2: memref<32x32xf32, #tpu.memory_space<vmem>>, %arg3: memref<32x1xf32, #tpu.memory_space<vmem>>, %arg4: memref<2x32xf32, #tpu.memory_space<vmem>>, %arg5: memref<2xf32, #tpu.memory_space<smem>>, %arg6: memref<2x100xf32, #tpu.memory_space<vmem>>, %arg7: memref<2x100xf32, #tpu.memory_space<vmem>>) attributes {dimension_semantics = [#tpu.dimension_semantics<parallel>], iteration_bounds = array<i64: 1>, scalar_prefetch = 0 : i64, scratch_operands = 0 : i64, tpu.core_type = #tpu.core_type<tc>, window_params = [{transform_indices = @transform_0, window_bounds = array<i64: 2, 32, 100>}, {pipeline_mode = #tpu.pipeline_mode<synchronous>, transform_indices = @transform_1, window_bounds = array<i64: 32, 32>}, {pipeline_mode = #tpu.pipeline_mode<synchronous>, transform_indices = @transform_2, window_bounds = array<i64: 32, 1>}, {pipeline_mode = #tpu.pipeline_mode<synchronous>, transform_indices = @transform_3, window_bounds = array<i64: 2, 32>}, {transform_indices = @transform_4, window_bounds = array<i64: 2>}, {transform_indices = @transform_5, window_bounds = array<i64: 2, 100>}, {transform_indices = @transform_6, window_bounds = array<i64: 2, 100>}]} {
    %c0 = arith.constant 0 : index
    %c0_0 = arith.constant 0 : index
    %0 = vector.load %arg2[%c0, %c0_0] : memref<32x32xf32, #tpu.memory_space<vmem>>, vector<32x32xf32>
    %c0_1 = arith.constant 0 : index
    %c0_2 = arith.constant 0 : index
    %1 = vector.load %arg3[%c0_1, %c0_2] : memref<32x1xf32, #tpu.memory_space<vmem>>, vector<32x1xf32>
    %c0_3 = arith.constant 0 : index
    %c0_4 = arith.constant 0 : index
    %2 = vector.load %arg4[%c0_3, %c0_4] : memref<2x32xf32, #tpu.memory_space<vmem>>, vector<2x32xf32>
    %c0_5 = arith.constant 0 : index
    %c0_6 = arith.constant 0 : index
    %c0_7 = arith.constant 0 : index
    %3 = vector.load %arg1[%c0_5, %c0_6, %c0_7] : memref<2x32x100xf32, #tpu.memory_space<vmem>>, vector<1x32x100xf32>
    %4 = vector.shape_cast %3 : vector<1x32x100xf32> to vector<32x100xf32>
    %cst = arith.constant dense<0.000000e+00> : vector<32x100xf32>
    %5 = tpu.matmul %0, %4, %cst {dimension_numbers = #tpu.dot_dimension_numbers<[1], [0], [0], [1], [0, 0, 1, 1], [], []>} : vector<32x32xf32>, vector<32x100xf32>, vector<32x100xf32> -> vector<32x100xf32>
    %6 = vector.broadcast %1 : vector<32x1xf32> to vector<32x100xf32>
    %7 = arith.addf %5, %6 : vector<32x100xf32>
    %cst_8 = arith.constant 0.000000e+00 : f32
    %8 = vector.broadcast %cst_8 : f32 to vector<32x100xf32>
    %9 = arith.maximumf %7, %8 : vector<32x100xf32>
    %cst_9 = arith.constant dense<0.000000e+00> : vector<2x100xf32>
    %10 = tpu.matmul %2, %9, %cst_9 {dimension_numbers = #tpu.dot_dimension_numbers<[1], [0], [0], [1], [0, 0, 1, 1], [], []>} : vector<2x32xf32>, vector<32x100xf32>, vector<2x100xf32> -> vector<2x100xf32>
    %11 = vector.extract_strided_slice %10 {offsets = [0, 0], sizes = [1, 100], strides = [1, 1]} : vector<2x100xf32> to vector<1x100xf32>
    %12 = vector.extract_strided_slice %10 {offsets = [1, 0], sizes = [1, 100], strides = [1, 1]} : vector<2x100xf32> to vector<1x100xf32>
    %c1 = arith.constant 1 : index
    %13 = memref.load %arg5[%c1] : memref<2xf32, #tpu.memory_space<smem>>
    %14 = vector.broadcast %13 : f32 to vector<1x100xf32>
    %15 = arith.addf %12, %14 : vector<1x100xf32>
    %cst_10 = arith.constant dense<0xFF800000> : vector<1xf32>
    %16 = vector.multi_reduction <maximumf>, %11, %cst_10 [1] : vector<1x100xf32> to vector<1xf32>
    %17 = vector.shape_cast %16 : vector<1xf32> to vector<1x1xf32>
    %18 = vector.broadcast %17 : vector<1x1xf32> to vector<1x100xf32>
    %19 = arith.subf %11, %18 : vector<1x100xf32>
    %20 = math.exp %19 : vector<1x100xf32>
    %cst_11 = arith.constant dense<0.000000e+00> : vector<1xf32>
    %21 = vector.multi_reduction <add>, %20, %cst_11 [1] : vector<1x100xf32> to vector<1xf32>
    %22 = vector.shape_cast %21 : vector<1xf32> to vector<1x1xf32>
    %23 = tpu.reciprocal %22 {approx = true} : vector<1x1xf32> -> vector<1x1xf32>
    %24 = vector.broadcast %23 : vector<1x1xf32> to vector<1x100xf32>
    %25 = arith.mulf %20, %24 : vector<1x100xf32>
    %c0_12 = arith.constant 0 : index
    %c0_13 = arith.constant 0 : index
    %26 = vector.load %arg6[%c0_12, %c0_13] : memref<2x100xf32, #tpu.memory_space<vmem>>, vector<1x100xf32>
    tpu.vector_store %arg6[%c0_12, %c0_13], %25 {strides = array<i32>} : memref<2x100xf32, #tpu.memory_space<vmem>>, vector<1x100xf32>,
    %c0_14 = arith.constant 0 : index
    %c0_15 = arith.constant 0 : index
    %27 = vector.load %arg7[%c0_14, %c0_15] : memref<2x100xf32, #tpu.memory_space<vmem>>, vector<1x100xf32>
    tpu.vector_store %arg7[%c0_14, %c0_15], %15 {strides = array<i32>} : memref<2x100xf32, #tpu.memory_space<vmem>>, vector<1x100xf32>,
    %c1_16 = arith.constant 1 : index
    %c0_17 = arith.constant 0 : index
    %c0_18 = arith.constant 0 : index
    %28 = vector.load %arg1[%c1_16, %c0_17, %c0_18] : memref<2x32x100xf32, #tpu.memory_space<vmem>>, vector<1x32x100xf32>
    %29 = vector.shape_cast %28 : vector<1x32x100xf32> to vector<32x100xf32>
    %cst_19 = arith.constant dense<0.000000e+00> : vector<32x100xf32>
    %30 = tpu.matmul %0, %29, %cst_19 {dimension_numbers = #tpu.dot_dimension_numbers<[1], [0], [0], [1], [0, 0, 1, 1], [], []>} : vector<32x32xf32>, vector<32x100xf32>, vector<32x100xf32> -> vector<32x100xf32>
    %31 = vector.broadcast %1 : vector<32x1xf32> to vector<32x100xf32>
    %32 = arith.addf %30, %31 : vector<32x100xf32>
    %cst_20 = arith.constant 0.000000e+00 : f32
    %33 = vector.broadcast %cst_20 : f32 to vector<32x100xf32>
    %34 = arith.maximumf %32, %33 : vector<32x100xf32>
    %cst_21 = arith.constant dense<0.000000e+00> : vector<2x100xf32>
    %35 = tpu.matmul %2, %34, %cst_21 {dimension_numbers = #tpu.dot_dimension_numbers<[1], [0], [0], [1], [0, 0, 1, 1], [], []>} : vector<2x32xf32>, vector<32x100xf32>, vector<2x100xf32> -> vector<2x100xf32>
    %36 = vector.extract_strided_slice %35 {offsets = [0, 0], sizes = [1, 100], strides = [1, 1]} : vector<2x100xf32> to vector<1x100xf32>
    %37 = vector.extract_strided_slice %35 {offsets = [1, 0], sizes = [1, 100], strides = [1, 1]} : vector<2x100xf32> to vector<1x100xf32>
    %c1_22 = arith.constant 1 : index
    %38 = memref.load %arg5[%c1_22] : memref<2xf32, #tpu.memory_space<smem>>
    %39 = vector.broadcast %38 : f32 to vector<1x100xf32>
    %40 = arith.addf %37, %39 : vector<1x100xf32>
    %cst_23 = arith.constant dense<0xFF800000> : vector<1xf32>
    %41 = vector.multi_reduction <maximumf>, %36, %cst_23 [1] : vector<1x100xf32> to vector<1xf32>
    %42 = vector.shape_cast %41 : vector<1xf32> to vector<1x1xf32>
    %43 = vector.broadcast %42 : vector<1x1xf32> to vector<1x100xf32>
    %44 = arith.subf %36, %43 : vector<1x100xf32>
    %45 = math.exp %44 : vector<1x100xf32>
    %cst_24 = arith.constant dense<0.000000e+00> : vector<1xf32>
    %46 = vector.multi_reduction <add>, %45, %cst_24 [1] : vector<1x100xf32> to vector<1xf32>
    %47 = vector.shape_cast %46 : vector<1xf32> to vector<1x1xf32>
    %48 = tpu.reciprocal %47 {approx = true} : vector<1x1xf32> -> vector<1x1xf32>
    %49 = vector.broadcast %48 : vector<1x1xf32> to vector<1x100xf32>
    %50 = arith.mulf %45, %49 : vector<1x100xf32>
    %c1_25 = arith.constant 1 : index
    %c0_26 = arith.constant 0 : index
    %51 = vector.load %arg6[%c1_25, %c0_26] : memref<2x100xf32, #tpu.memory_space<vmem>>, vector<1x100xf32>
    tpu.vector_store %arg6[%c1_25, %c0_26], %50 {strides = array<i32>} : memref<2x100xf32, #tpu.memory_space<vmem>>, vector<1x100xf32>,
    %c1_27 = arith.constant 1 : index
    %c0_28 = arith.constant 0 : index
    %52 = vector.load %arg7[%c1_27, %c0_28] : memref<2x100xf32, #tpu.memory_space<vmem>>, vector<1x100xf32>
    tpu.vector_store %arg7[%c1_27, %c0_28], %40 {strides = array<i32>} : memref<2x100xf32, #tpu.memory_space<vmem>>, vector<1x100xf32>,
    return
  }
  func.func @transform_0(%arg0: i32) -> (i32, i32, i32) {
    %c0_i32 = arith.constant 0 : i32
    %c0_i32_0 = arith.constant 0 : i32
    %c0_i32_1 = arith.constant 0 : i32
    return %arg0, %c0_i32, %c0_i32_0 : i32, i32, i32
  }
  func.func @transform_1(%arg0: i32) -> (i32, i32) {
    %c0_i32 = arith.constant 0 : i32
    %c0_i32_0 = arith.constant 0 : i32
    %c0_i32_1 = arith.constant 0 : i32
    return %c0_i32, %c0_i32_0 : i32, i32
  }
  func.func @transform_2(%arg0: i32) -> (i32, i32) {
    %c0_i32 = arith.constant 0 : i32
    %c0_i32_0 = arith.constant 0 : i32
    %c0_i32_1 = arith.constant 0 : i32
    return %c0_i32, %c0_i32_0 : i32, i32
  }
  func.func @transform_3(%arg0: i32) -> (i32, i32) {
    %c0_i32 = arith.constant 0 : i32
    %c0_i32_0 = arith.constant 0 : i32
    %c0_i32_1 = arith.constant 0 : i32
    return %c0_i32, %c0_i32_0 : i32, i32
  }
  func.func @transform_4(%arg0: i32) -> i32 {
    %c0_i32 = arith.constant 0 : i32
    %c0_i32_0 = arith.constant 0 : i32
    return %c0_i32 : i32
  }
  func.func @transform_5(%arg0: i32) -> (i32, i32) {
    %c0_i32 = arith.constant 0 : i32
    %c0_i32_0 = arith.constant 0 : i32
    return %arg0, %c0_i32 : i32, i32
  }
  func.func @transform_6(%arg0: i32) -> (i32, i32) {
    %c0_i32 = arith.constant 0 : i32
    %c0_i32_0 = arith.constant 0 : i32
    return %arg0, %c0_i32 : i32, i32
  }
}

</mosaic_0001>

<bundles_post_ra>
// kernel: tpu_custom_call.1
= control target key start
LH: loop header
LB: loop body
LE: loop exit
PB: predicated region body
PF: predicated region fallthrough
CT: control target
= control target key end

     0   :  { %12 = vsyncpa [#allocation3], 0  ;;  %s838_s0 = inlined_call_operand.hbm [shape: f32[2,32,100], index: 0, kind: input, shape index: {}]   ;;  %s839_s1 = inlined_call_operand.vmem [shape: f32[32,32], index: 1, kind: input, shape index: {}]   ;;  %s840_s2 = inlined_call_operand.vmem [shape: f32[32,1], index: 2, kind: input, shape index: {}]   ;;  %s841_s3 = inlined_call_operand.vmem [shape: f32[2,32], index: 3, kind: input, shape index: {}]   ;;  %s842_s4 = inlined_call_operand.vmem [shape: f32[2], index: 4, kind: input, shape index: {}]   ;;  %s843_s5 = inlined_call_operand.hbm [shape: f32[2,100], index: 5, kind: output, shape index: {0}]   ;;  %s844_s6 = inlined_call_operand.hbm [shape: f32[2,100], index: 6, kind: output, shape index: {1}]  }
   0x1   :  { %13 = vsyncpa [#allocation5], 0 }
   0x2   :  { %14 = vsyncpa [#allocation4], 0 }
   0x3   :  { %15 = vsyncpa [#allocation9], 0  ;;  %s709_s21 = smov [#allocation2]   ;;  %s40_s25 = sshll.u32 %s842_s4, 4  ;;  %s41_s25 = int_to_ptr.vmem [resolvable:$true] %s40_s25 }
   0x4   :  { %s21_s22 = sshll.u32 %s709_s21, 4  ;;  %s623_s28 = scalar_lea.hbm %s838_s0, 1024  ;;  %s22_s22 = int_to_ptr.vmem [resolvable:$true] %s21_s22 }
   0x5   :  { %p624_p0 = scmp.ne.s32.totalorder %s838_s0, %s623_s28  ;;  %p627_p1 = scmp.lt.u32.totalorder %s623_s28, %s838_s0 }
   0x7   :  { %p629_p2 = pnand %p627_p1, %p624_p0 }
   0x9   :  { %632 = shalt.err (!%p629_p2)
}
   0xa   :  { %s633_s9 = scalar_lea.vmem %s22_s22, 1024  ;;  %p638_p4 = scmp.lt.s32.totalorder %s22_s22, %s22_s22 }
   0xb   :  { %p634_p3 = scmp.ne.s32.totalorder %s22_s22, %s633_s9  ;;  %p639_p5 = scmp.lt.s32.totalorder %s633_s9, %s633_s9 }
   0xd   :  { %p640_p6 = por %p639_p5, %p638_p4 }
   0xf   :  { %p641_p7 = pnand %p640_p6, %p634_p3 }
  0x11   :  { %644 = shalt.err (!%p641_p7)
}
  0x12   :  { %s710_s4 = smov 128   ;;  %s711_s10 = smov 8  }
  0x13   :  { %27 = dma.hbm_to_vmem [thread:$0]  %s838_s0, 1024, %s22_s22, [#allocation3], %s710_s4, %s710_s4, %s711_s10  }
  0x14   :  { %s645_s13 = scalar_lea.vmem %s41_s25, 16  ;;  %p650_p9 = scmp.lt.s32.totalorder %s41_s25, %s41_s25 }
  0x15   :  { %p646_p8 = scmp.ne.s32.totalorder %s41_s25, %s645_s13  ;;  %p651_p10 = scmp.lt.s32.totalorder %s645_s13, %s645_s13 }
  0x17   :  { %p652_p11 = por %p651_p10, %p650_p9 }
  0x19   :  { %p653_p12 = pnand %p652_p11, %p646_p8 }
  0x1b   :  { %656 = shalt.err (!%p653_p12)
}
  0x1c   :  { %s712_s14 = smov [#allocation6]  }
  0x1d   :  { %43 = dma.vmem_to_smem %s41_s25, 16, %s712_s14, [#allocation5]  }
  0x1e   :  { %701 = dma.done.wait [#allocation3], 1024  }
  0x1f   :  { %702 = vsyncadd [#allocation3], 4294966272 }
  0x20   :  { %703 = dma.done.wait [#allocation5], 16  }
  0x21   :  { %704 = vsyncadd [#allocation5], 4294967280 }
  0x22   :  { %50 = sfence }
  0x23   :  { %v60_v0 = vld [vmem:[#allocation2] sm:$0xff]  ;;  %v61_v1 = vld [vmem:[#allocation2 + $0x8] sm:$0xff]  ;;  %v62_v2 = vld [vmem:[#allocation2 + $0x10] sm:$0xff]  ;;  %vm84_vm0 = vcmask 261120   ;;  %v713_v6 = vmov 0   ;;  %v714_v21 = vmov 0.0|0.0  }
  0x24   :  { %v575_v3 = vpack.c.bf16 %v61_v1, %v60_v0  ;;  %v63_v4 = vld [vmem:[#allocation2 + $0x18] sm:$0xff]  ;;  %v51_v5 = vld [vmem:[%s839_s1] sm:$0xff]  ;;  %613 = vset.pattern.permute.xlu0 %v713_v6  ;;  %614 = vset.pattern.permute.xlu1 %v713_v6  ;;  %v279_v9 = vld [vmem:[#allocation2 + $0x28] sm:$0xff]  ;;  %vm715_vm1 = vmmov 0   ;;  %v716_v22 = vmov 0.0   ;;  %s492_s30 = sld [smem:[#allocation6 + $0x1]] }
  0x25   :  { %v579_v7 = vpack.c.bf16 %v63_v4, %v62_v2  ;;  %533 = vmatprep.mubr.msk.f32.mxu0 %vm84_vm0, %v51_v5  ;;  %v278_v8 = vld [vmem:[#allocation2 + $0x20] sm:$0xff]  ;;  %v57_v11 = vld [vmem:[%s840_s2 + $0x10] sm:$0xff]  ;;  %v281_v14 = vld [vmem:[#allocation2 + $0x38] sm:$0xff]  ;;  %583 = vmatprep.subr.bf16.mxu1 %v714_v21  ;;  %vm262_vm2 = vcmask 811008   ;;  %vm275_vm3 = vcmask 812033  }
  0x26   :  { %576 = vmatprep.subr.bf16.mxu0 %v575_v3  ;;  %v55_v10 = vld [vmem:[%s840_s2] sm:$0xff]  ;;  %v589_v12 = vpack.c.bf16 %v279_v9, %v278_v8  ;;  %v280_v13 = vld [vmem:[#allocation2 + $0x30] sm:$0xff]  ;;  %76 = vperm.xlu1 %614, %v57_v11   ;;  %v56_v15 = vld [vmem:[%s840_s2 + $0x8] sm:$0xff] }
  0x27   :  { %578 = vmatpush3.bf16.msra.mxu0 %v575_v3  ;;  %66 = vperm.xlu0 %613, %v55_v10   ;;  %v58_v16 = vld [vmem:[%s840_s2 + $0x18] sm:$0xff]  ;;  %v52_v17 = vld [vmem:[%s839_s1 + $0x8] sm:$0xff]  ;;  %v53_v18 = vld [vmem:[%s839_s1 + $0x10] sm:$0xff]  ;;  %v593_v19 = vpack.c.bf16 %v281_v14, %v280_v13 }
  0x28   :  { %580 = vmatprep.subr.bf16.mxu0 %v579_v7  ;;  %v54_v20 = vld [vmem:[%s839_s1 + $0x18] sm:$0xff]  ;;  %547 = vmatprep.mubr.msk.f32.mxu1 %vm715_vm1, %v716_v22  ;;  %v59_v48 = vld [vmem:[%s841_s3] sm:$0x3]  ;;  %s717_s3 = smov [#allocation8]  }
  0x29   :  { %s473_s7 = sshll.u32 %s717_s3, 4  ;;  %s474_s7 = int_to_ptr.vmem [resolvable:$true] %s473_s7 }
  0x2a   :  { %81 = vperm.xlu1 %614, %v58_v16   ;;  %v260_v56 = vstv %s492_s30  ;;  %s657_s8 = scalar_lea.vmem %s474_s7, 32  ;;  %p662_p0 = scmp.lt.s32.totalorder %s474_s7, %s474_s7 }
  0x2b   :  { %582 = vmatpush3.bf16.msra.mxu0 %v579_v7  ;;  %71 = vperm.xlu0 %613, %v56_v15   ;;  %p658_p13 = scmp.ne.s32.totalorder %s474_s7, %s657_s8  ;;  %p663_p1 = scmp.lt.s32.totalorder %s657_s8, %s657_s8 }
  0x2c   :  { %590 = vmatprep.subr.bf16.mxu0 %v589_v12 }
  0x2d   :  { %p664_p2 = por %p663_p1, %p662_p0 }
  0x2e   :  { %534 = vmatmul.mubr.msk.f32.vlgmr.msra.gmra.mrb[0].mxu0 %vm84_vm0, %v52_v17 }
  0x2f   :  { %592 = vmatpush3.bf16.msra.mxu0 %v589_v12  ;;  %536 = vmatprep.mubr.msk.f32.mxu0 %vm84_vm0, %v53_v18  ;;  %p665_p3 = pnand %p664_p2, %p658_p13 }
  0x30   :  { %594 = vmatprep.subr.bf16.mxu0 %v593_v19 }
  0x32   :  { %537 = vmatmul.mubr.msk.f32.gmra.mrb[2].mxu0 %vm84_vm0, %v54_v20 }
  0x33   :  { %596 = vmatpush3.bf16.msra.mxu0 %v593_v19  ;;  %558 = vmatprep.mubr.msk.f32.mxu0 %vm84_vm0, %v51_v5 }
  0x36   :  { %559 = vmatmul.mubr.msk.f32.vlgmr.msra.gmra.mrb[4].mxu0 %vm84_vm0, %v52_v17 }
  0x37   :  { %561 = vmatprep.mubr.msk.f32.mxu0 %vm84_vm0, %v53_v18 }
  0x3a   :  { %562 = vmatmul.mubr.msk.f32.gmra.mrb[6].mxu0 %vm84_vm0, %v54_v20 }
  0xa5   :  { %v77_v24 = vpop.permute.xlu1 %76 }
  0xa6   :  { %v67_v23 = vpop.permute.xlu0 %66 }
  0xa9   :  { %v82_v32 = vpop.permute.xlu1 %81 }
  0xaa   :  { %v72_v25 = vpop.permute.xlu0 %71 }
 0x101   :  { %v535_v26 = vpop.f32.mrb[0].mxu0 }
 0x102   :  { %v169_v27 = vadd.f32 %v535_v26, %v72_v25  ;;  %v163_v28 = vpop.f32.mrb[1].mxu0 }
 0x103   :  { %v164_v29 = vadd.f32 %v163_v28, %v67_v23 }
 0x104   :  { %v183_v30 = vmax.f32 %v169_v27, 0.0 }
 0x105   :  { %v182_v31 = vmax.f32 %v164_v29, 0.0  ;;  %v538_v33 = vpop.f32.mrb[2].mxu0 }
 0x106   :  { %v179_v34 = vadd.f32 %v538_v33, %v82_v32  ;;  %v173_v35 = vpop.f32.mrb[3].mxu0 }
 0x107   :  { %v174_v36 = vadd.f32 %v173_v35, %v77_v24  ;;  %v584_v37 = vpack.c.bf16 %v183_v30, %v182_v31 }
 0x108   :  { %v185_v38 = vmax.f32 %v179_v34, 0.0 }
 0x109   :  { %v184_v39 = vmax.f32 %v174_v36, 0.0  ;;  %585 = vmatpush3.bf16.msra.mxu1 %v584_v37  ;;  %v560_v40 = vpop.f32.mrb[4].mxu0 }
 0x10a   :  { %v354_v41 = vadd.f32 %v560_v40, %v72_v25  ;;  %v348_v42 = vpop.f32.mrb[5].mxu0  ;;  %586 = vmatprep.subr.bf16.mxu1 %v714_v21 }
 0x10b   :  { %v587_v43 = vpack.c.bf16 %v185_v38, %v184_v39  ;;  %v349_v44 = vadd.f32 %v348_v42, %v67_v23 }
 0x10c   :  { %v368_v45 = vmax.f32 %v354_v41, 0.0 }
 0x10d   :  { %v367_v46 = vmax.f32 %v349_v44, 0.0  ;;  %588 = vmatpush3.bf16.msra.mxu1 %v587_v43  ;;  %v563_v47 = vpop.f32.mrb[6].mxu0 }
 0x10e   :  { %v364_v49 = vadd.f32 %v563_v47, %v82_v32  ;;  %v358_v50 = vpop.f32.mrb[7].mxu0  ;;  %597 = vmatprep.subr.bf16.mxu1 %v714_v21 }
 0x10f   :  { %v598_v51 = vpack.c.bf16 %v368_v45, %v367_v46  ;;  %v359_v52 = vadd.f32 %v358_v50, %v77_v24 }
 0x110   :  { %v370_v53 = vmax.f32 %v364_v49, 0.0  ;;  %548 = vmatmul.mubr.msk.f32.vlgmr.msra.gmra.mrb[0].mxu1 %vm84_vm0, %v59_v48 }
 0x111   :  { %v369_v54 = vmax.f32 %v359_v52, 0.0  ;;  %599 = vmatpush3.bf16.msra.mxu1 %v598_v51  ;;  %572 = vmatprep.mubr.msk.f32.mxu1 %vm715_vm1, %v716_v22 }
 0x112   :  { %600 = vmatprep.subr.bf16.mxu1 %v714_v21 }
 0x113   :  { %v601_v55 = vpack.c.bf16 %v370_v53, %v369_v54 }
 0x115   :  { %602 = vmatpush3.bf16.msra.mxu1 %v601_v55 }
 0x118   :  { %573 = vmatmul.mubr.msk.f32.vlgmr.msra.gmra.mrb[2].mxu1 %vm84_vm0, %v59_v48 }
 0x1e3   :  { %v255_v57 = vpop.f32.mrb[0].mxu1 }
 0x1e4   :  { %v261_v58 = vadd.f32 %v260_v56, %v255_v57  ;;  %v263_v59 = vsel %vm262_vm2, %v255_v57, -inf  ;;  %v549_v60 = vpop.f32.mrb[1].mxu1 }
 0x1e5   :  { %264 = vmax.xlane.f32.xlu0 %v263_v59 }
 0x1e6   :  { %276 = vst.msk [vmem:[#allocation8 - $0x1] sm:$0x2] %vm275_vm3, %v261_v58 }
 0x1eb   :  { %v437_v61 = vpop.f32.mrb[2].mxu1 }
 0x1ec   :  { %v443_v62 = vadd.f32 %v437_v61, %v260_v56  ;;  %v574_v63 = vpop.f32.mrb[3].mxu1  ;;  %v444_v0 = vsel %vm262_vm2, %v437_v61, -inf }
 0x1ed   :  { %445 = vmax.xlane.f32.xlu1 %v444_v0 }
 0x1ee   :  { %456 = vst.msk [vmem:[#allocation8] sm:$0x2] %vm275_vm3, %v443_v62 }
 0x272   :  { %v265_v1 = vpop.xlane.xlu0 %264 }
 0x273   :  { %v266_v2 = vsub.f32 %v255_v57, %v265_v1 }
 0x275   :  { %v267_v3 = vmul.f32 1.442695, %v266_v2 }
 0x277   :  { %615 = vpow2.f32 %v267_v3 }
 0x27a   :  { %v446_v4 = vpop.xlane.xlu1 %445 }
 0x27b   :  { %v447_v5 = vsub.f32 %v437_v61, %v446_v4 }
 0x27d   :  { %v448_v6 = vmul.f32 1.442695, %v447_v5 }
 0x27f   :  { %617 = vpow2.f32 %v448_v6 }
 0x281   :  { %v616_v7 = vpop.eup %615 }
 0x282   :  { %v269_v8 = vsel %vm262_vm2, %v616_v7, 0.0 }
 0x283   :  { %270 = vadd.xlane.f32.xlu0 %v269_v8 }
 0x289   :  { %v618_v9 = vpop.eup %617 }
 0x28a   :  { %v450_v10 = vsel %vm262_vm2, %v618_v9, 0.0 }
 0x28b   :  { %451 = vadd.xlane.f32.xlu0 %v450_v10 }
 0x28c   :  { %668 = shalt.err (!%p665_p3)
}
 0x28d   :  { %s669_s10 = scalar_lea.hbm %s844_s6, 32 }
 0x28e   :  { %p670_p4 = scmp.ne.s32.totalorder %s844_s6, %s669_s10  ;;  %p673_p5 = scmp.lt.u32.totalorder %s669_s10, %s844_s6 }
 0x290   :  { %p675_p6 = pnand %p673_p5, %p670_p4 }
 0x292   :  { %678 = shalt.err (!%p675_p6)
}
 0x293   :  { %476 = dma.vmem_to_hbm [thread:$0]  %s474_s7, 32, %s844_s6, [#allocation9]  }
 0x294   :  { %s718_s16 = smov [#allocation7]  }
 0x295   :  { %s463_s17 = sshll.u32 %s718_s16, 4  ;;  %s464_s17 = int_to_ptr.vmem [resolvable:$true] %s463_s17 }
 0x296   :  { %s679_s18 = scalar_lea.vmem %s464_s17, 32  ;;  %p684_p8 = scmp.lt.s32.totalorder %s464_s17, %s464_s17 }
 0x297   :  { %p680_p7 = scmp.ne.s32.totalorder %s464_s17, %s679_s18  ;;  %p685_p9 = scmp.lt.s32.totalorder %s679_s18, %s679_s18 }
 0x299   :  { %p686_p10 = por %p685_p9, %p684_p8 }
 0x29b   :  { %p687_p11 = pnand %p686_p10, %p680_p7 }
 0x310   :  { %v271_v11 = vpop.xlane.xlu0 %270 }
 0x311   :  { %619 = vrcp.f32 %v271_v11 }
 0x318   :  { %v452_v12 = vpop.xlane.xlu0 %451 }
 0x319   :  { %621 = vrcp.f32 %v452_v12 }
 0x31b   :  { %v620_v13 = vpop.eup %619 }
 0x31c   :  { %v273_v14 = vmul.f32 %v620_v13, %v616_v7 }
 0x31e   :  { %274 = vst.msk [vmem:[#allocation7] sm:$0x1] %vm262_vm2, %v273_v14 }
 0x323   :  { %v622_v15 = vpop.eup %621 }
 0x324   :  { %v454_v16 = vmul.f32 %v622_v15, %v618_v9 }
 0x326   :  { %455 = vst.msk [vmem:[#allocation7 + $0x1] sm:$0x1] %vm262_vm2, %v454_v16 }
 0x327   :  { %690 = shalt.err (!%p687_p11)
}
 0x328   :  { %s691_s20 = scalar_lea.hbm %s843_s5, 32 }
 0x329   :  { %p692_p12 = scmp.ne.s32.totalorder %s843_s5, %s691_s20  ;;  %p695_p13 = scmp.lt.u32.totalorder %s691_s20, %s843_s5 }
 0x32b   :  { %p697_p0 = pnand %p695_p13, %p692_p12 }
 0x32d   :  { %700 = shalt.err (!%p697_p0)
}
 0x32e   :  { %466 = dma.vmem_to_hbm [thread:$0]  %s464_s17, 32, %s843_s5, [#allocation4]  }
 0x32f   :  { %705 = dma.done.wait [#allocation4], 32  }
 0x330   :  { %706 = vsyncadd [#allocation4], 4294967264 }
 0x331   :  { %707 = dma.done.wait [#allocation9], 32  }
 0x332   :  { %708 = vsyncadd [#allocation9], 4294967264 }
 0x333   :  { %483 = vsyncpa [#allocation3], 1 }
 0x334   :  { %484 = vsyncpa [#allocation4], 1 }
 0x335   :  { %485 = vsyncpa [#allocation9], 1 }
 0x336   :  { %486 = vsyncpa [#allocation5], 1 }

</bundles_post_ra>
